<compile_context>
chip_gen: v7x
topology: tpu7x:2x2x1
jax: 0.10.0
libtpu: 0.0.40
codegen_flags: <defaults>
</compile_context>

<pallas_src>
import functools

import jax
import jax.numpy as jnp
from jax.experimental import pallas as pl
from jax.experimental.pallas import tpu as pltpu


def _round_up(x, m):
    return ((x + m - 1) // m) * m


def _tpu_generation() -> str:
    """Best-effort TPU generation detection from the device kind string."""
    try:
        kind = jax.devices()[0].device_kind.lower()
    except Exception:
        return "unknown"
    if "v5 lite" in kind or "v5lite" in kind or "v5e" in kind:
        return "v5e"
    if "v6" in kind:          # "TPU v6 lite" / "TPU v6e" (Trillium)
        return "v6e"
    if "7" in kind:           # "TPU7x" / "TPU v7x"
        return "v7x"
    return "unknown"


def select_ffn_config():
    """Per-generation (tm, th, vmem_limit_bytes, num_cores) tile config."""
    gen = _tpu_generation()
    if gen == "v7x":
        # 64 MiB VMEM, 2 TCs sharing HBM: big tm for intensity, small th +
        # single-buffered x/out to fit; cap VMEM well below physical.
        cfg = dict(tm=1024, th=256, vmem_limit_bytes=56 * 2**20, num_cores=2)
    elif gen == "v6e":
        # 128 MiB VMEM, ~650 FLOPs/byte crossover -> tm~1024 keeps MXU-bound.
        cfg = dict(tm=1024, th=512, vmem_limit_bytes=100 * 2**20, num_cores=1)
    elif gen == "v5e":
        # Crossover ~240 FLOPs/byte: tm=512 already has margin; th mult of 128.
        cfg = dict(tm=512, th=256, vmem_limit_bytes=96 * 2**20, num_cores=1)
    else:
        cfg = dict(tm=512, th=256, vmem_limit_bytes=64 * 2**20, num_cores=1)
    # Defensive cap: never request more than ~85% of physical VMEM.
    try:
        cap = pltpu.get_tpu_info().vmem_capacity_bytes
        cfg["vmem_limit_bytes"] = min(cfg["vmem_limit_bytes"], int(0.85 * cap))
    except Exception:
        pass
    return cfg


def prepare_ffn_weights(w1, w2, w3, *, th, compute_dtype=jnp.bfloat16):
    """Offline (once-per-model) weight re-layout.  Do NOT call per step.

    Inputs use PyTorch [out, in] layouts: w1, w3: (H, D); w2: (D, H).
    Returns:
      w13: (D, 2*Hp) compute_dtype — [in, out] layout, per-H-tile interleaved
           [gate | up] columns: one (tm,D)x(D,2*th) MXU pass per step yields
           both projections, with no in-kernel transpose.
      w2t: (Hp, D) compute_dtype — w2 transposed to [in, out] layout.
      th : effective H tile size (clamped for tiny H); pass to feed_forward.
    """
    H, D = w1.shape
    assert w3.shape == (H, D) and w2.shape == (D, H)
    th = min(th, _round_up(H, 8))
    th = _round_up(th, 8)
    Hp = _round_up(H, th)

    w1t = jnp.asarray(w1).astype(compute_dtype).T    # (D, H)
    w3t = jnp.asarray(w3).astype(compute_dtype).T    # (D, H)
    w2t = jnp.asarray(w2).astype(compute_dtype).T    # (H, D)
    if Hp != H:
        # Zero columns/rows contribute exactly zero (silu(0)*0 = 0).
        w1t = jnp.pad(w1t, ((0, 0), (0, Hp - H)))
        w3t = jnp.pad(w3t, ((0, 0), (0, Hp - H)))
        w2t = jnp.pad(w2t, ((0, Hp - H), (0, 0)))

    nk = Hp // th
    # Interleave per th-tile: tile k occupies columns [2k*th, (2k+2)*th) =
    # [w1 tile k | w3 tile k].
    w13 = jnp.stack([w1t.reshape(D, nk, th), w3t.reshape(D, nk, th)], axis=2)
    w13 = w13.reshape(D, 2 * Hp)
    return w13, w2t, th


def _ffn_kernel(x_ref, w13_ref, w2_ref, o_ref, acc_ref, *, th):
    """One (M-tile, H-tile) step of the SwiGLU FFN.

    x_ref  : (tm, D)     input rows (bf16), resident across the H axis
    w13_ref: (D, 2*th)   fused [gate | up] projection tile, [in, out] layout
    w2_ref : (th, D)     down projection tile, [in, out] layout
    o_ref  : (tm, D)     output rows (written once, on last H step)
    acc_ref: (tm, D)     fp32 accumulator (scratch)
    """
    kh = pl.program_id(1)

    @pl.when(kh == 0)
    def _init():
        acc_ref[...] = jnp.zeros_like(acc_ref)

    x = x_ref[...]

    # Single MXU pass for gate+up: (tm, D) x (D, 2*th) -> (tm, 2*th), fp32 acc.
    h = jnp.dot(x, w13_ref[...], preferred_element_type=jnp.float32)
    h1 = h[:, :th]      # gate
    h3 = h[:, th:]      # up

    # SiLU(gate) * up in fp32 (VPU/EUP elementwise).
    g = (h1 * jax.nn.sigmoid(h1)) * h3

    # Partial down projection for this H chunk: (tm, th) x (th, D) -> (tm, D).
    acc_ref[...] += jnp.dot(g.astype(w2_ref.dtype), w2_ref[...],
                            preferred_element_type=jnp.float32)

    @pl.when(kh == pl.num_programs(1) - 1)
    def _finalize():
        o_ref[...] = acc_ref[...].astype(o_ref.dtype)


def _single_buffered_spec(block_shape, index_map):
    # x / out are fetched / written once per M tile (index constant along the
    # inner H axis): double-buffering them is pure VMEM waste.
    try:
        return pl.BlockSpec(block_shape, index_map, pipeline_mode=pl.Buffered(1))
    except TypeError:  # older jax without pipeline_mode: fall back gracefully
        return pl.BlockSpec(block_shape, index_map)


@functools.partial(
    jax.jit,
    static_argnames=("tm", "th", "vmem_limit_bytes", "compute_dtype"))
def _feed_forward_impl(x, w13, w2t, *, tm, th, vmem_limit_bytes, compute_dtype):
    B, S, D = x.shape
    D2, Hp2 = w13.shape
    Hp = Hp2 // 2
    assert D2 == D and w2t.shape == (Hp, D) and Hp % th == 0
    M = B * S
    Mp = _round_up(M, tm)
    out_dtype = x.dtype

    x2d = x.reshape(M, D)
    if x2d.dtype != compute_dtype:
        # Prefer passing activations already in the compute dtype; this cast
        # is an extra HBM round-trip of the activations when it fires.
        x2d = x2d.astype(compute_dtype)
    if Mp != M:
        x2d = jnp.pad(x2d, ((0, Mp - M), (0, 0)))   # zero rows -> zero output

    n_m_tiles = Mp // tm
    wbytes = jnp.dtype(compute_dtype).itemsize
    # Weights are re-streamed once per M tile; x read once, out written once.
    cost = pl.CostEstimate(
        flops=6 * M * D * Hp,
        transcendentals=M * Hp,
        bytes_accessed=(Mp * D * (wbytes + jnp.dtype(out_dtype).itemsize)
                        + n_m_tiles * 3 * D * Hp * wbytes),
    )

    out2d = pl.pallas_call(
        functools.partial(_ffn_kernel, th=th),
        out_shape=jax.ShapeDtypeStruct((Mp, D), out_dtype),
        grid_spec=pltpu.PrefetchScalarGridSpec(
            num_scalar_prefetch=0,
            grid=(n_m_tiles, Hp // th),
            in_specs=[
                # x rows: constant along the H axis -> resident, single-buffered.
                _single_buffered_spec((tm, D), lambda i, k: (i, 0)),
                # Fused [gate|up] weight tile, streamed (double-buffered) along H.
                pl.BlockSpec((D, 2 * th), lambda i, k: (0, k)),
                # Down-projection tile, [in, out] layout (no in-kernel transpose).
                pl.BlockSpec((th, D), lambda i, k: (k, 0)),
            ],
            # Output written once per M tile -> single-buffered.
            out_specs=_single_buffered_spec((tm, D), lambda i, k: (i, 0)),
            scratch_shapes=[pltpu.VMEM((tm, D), jnp.float32)],
        ),
        compiler_params=pltpu.CompilerParams(
            dimension_semantics=("parallel", "arbitrary"),
            vmem_limit_bytes=vmem_limit_bytes,
        ),
        cost_estimate=cost,
    )(x2d, w13, w2t)

    return out2d[:M].reshape(B, S, D)


def feed_forward(x, w13, w2t, *, th, tm=None, vmem_limit_bytes=None,
                 num_cores=None, compute_dtype=jnp.bfloat16):
    """x: [B, S, D]; (w13, w2t, th) from prepare_ffn_weights()."""
    if tm is None or vmem_limit_bytes is None or num_cores is None:
        cfg = select_ffn_config()
        tm = cfg["tm"] if tm is None else tm
        vmem_limit_bytes = (cfg["vmem_limit_bytes"]
                            if vmem_limit_bytes is None else vmem_limit_bytes)
        num_cores = cfg["num_cores"] if num_cores is None else num_cores

    B, S, D = x.shape
    M = B * S
    tm = min(tm, _round_up(M, 8))
    # Megacore guard: on multi-TC parts make sure every core gets an M tile.
    if num_cores > 1 and M > 256 and -(-M // tm) < num_cores:
        tm = max(256, _round_up(-(-M // num_cores), 128))

    return _feed_forward_impl(x, w13, w2t, tm=tm, th=th,
                              vmem_limit_bytes=vmem_limit_bytes,
                              compute_dtype=compute_dtype)


def _init_linear(key, out_dim, in_dim, gain=1.0):
    # Deterministic xavier-normal-style init (stand-in for
    # init_whole_model_weights; synthetic, not a checkpoint load).
    std = gain * (2.0 / (in_dim + out_dim)) ** 0.5
    return std * jax.random.normal(key, (out_dim, in_dim), dtype=jnp.float32)


if __name__ == "__main__":
    # Module config: dim=32, ffn_dim_multiplier=2.0 -> hidden_dim=64
    dim = 32
    ffn_dim_multiplier = 2.0
    hidden_dim = int(dim * ffn_dim_multiplier)
    gain = 1.0
    B, S = 2, 8

    key = jax.random.PRNGKey(0)
    kx, k1, k2, k3 = jax.random.split(key, 4)

    x = jax.random.normal(kx, (B, S, dim), dtype=jnp.float32)
    w1 = _init_linear(k1, hidden_dim, dim, gain)   # (H, D) PyTorch [out, in]
    w2 = _init_linear(k2, dim, hidden_dim, gain)   # (D, H)
    w3 = _init_linear(k3, hidden_dim, dim, gain)   # (H, D)

    cfg = select_ffn_config()

    # Offline, once-per-model weight prep (outside jit): cast to bf16,
    # transpose to [in, out], pad H to a tile multiple, fuse w1/w3.
    w13, w2t, th = prepare_ffn_weights(w1, w2, w3, th=cfg["th"])

    # Keep activations in the compute dtype so the wrapper's cast is a no-op.
    x_c = x.astype(jnp.bfloat16)

    out = feed_forward(x_c, w13, w2t, th=th, tm=cfg["tm"],
                       vmem_limit_bytes=cfg["vmem_limit_bytes"],
                       num_cores=cfg["num_cores"])
    out = jax.block_until_ready(out)
    assert out.shape == (B, S, dim)

    # Reference in plain JAX mirroring the kernel dtypes
    # (bf16 dot operands, fp32 accumulation / elementwise).
    w1c = w1.astype(jnp.bfloat16)
    w2c = w2.astype(jnp.bfloat16)
    w3c = w3.astype(jnp.bfloat16)
    h1 = jnp.dot(x_c, w1c.T, preferred_element_type=jnp.float32)
    h3 = jnp.dot(x_c, w3c.T, preferred_element_type=jnp.float32)
    g = (jax.nn.silu(h1) * h3).astype(jnp.bfloat16)
    ref = jnp.dot(g, w2c.T, preferred_element_type=jnp.float32).astype(out.dtype)
    assert jnp.allclose(out.astype(jnp.float32), ref.astype(jnp.float32),
                        atol=2e-2, rtol=2e-2), "mismatch vs bf16 reference"

    # Sanity: also close to pure-fp32 math (loose tol for bf16 rounding).
    ref32 = (jax.nn.silu(x @ w1.T) * (x @ w3.T)) @ w2.T
    assert jnp.allclose(out.astype(jnp.float32), ref32,
                        atol=5e-2, rtol=5e-2), "mismatch vs fp32 reference"

    print("KERNEL_OK")
</pallas_src>

<mosaic_0001>
module attributes {stable_mosaic.version = 11 : i64} {
  func.func @_ffn_kernel(%arg0: i32, %arg1: i32, %arg2: memref<16x32xbf16, #tpu.memory_space<vmem>>, %arg3: memref<32x128xbf16, #tpu.memory_space<vmem>>, %arg4: memref<64x32xbf16, #tpu.memory_space<vmem>>, %arg5: memref<16x32xbf16, #tpu.memory_space<vmem>>, %arg6: memref<16x32xf32, #tpu.memory_space<vmem>>) attributes {dimension_semantics = [#tpu.dimension_semantics<parallel>, #tpu.dimension_semantics<arbitrary>], iteration_bounds = array<i64: 1, 1>, scalar_prefetch = 0 : i64, scratch_operands = 1 : i64, tpu.core_type = #tpu.core_type<tc>, window_params = [{pipeline_mode = #tpu.pipeline_mode<synchronous>, transform_indices = @transform_0, window_bounds = array<i64: 16, 32>}, {transform_indices = @transform_1, window_bounds = array<i64: 32, 128>}, {transform_indices = @transform_2, window_bounds = array<i64: 64, 32>}, {pipeline_mode = #tpu.pipeline_mode<synchronous>, transform_indices = @transform_3, window_bounds = array<i64: 16, 32>}]} {
    %c0_i32 = arith.constant 0 : i32
    %0 = arith.cmpi eq, %arg1, %c0_i32 : i32
    %1 = arith.extui %0 : i1 to i32
    %c0_i32_0 = arith.constant 0 : i32
    %2 = arith.cmpi ne, %1, %c0_i32_0 : i32
    scf.if %2 {
      %cst_14 = arith.constant 0.000000e+00 : f32
      %24 = vector.broadcast %cst_14 : f32 to vector<16x32xf32>
      %c0_15 = arith.constant 0 : index
      %c0_16 = arith.constant 0 : index
      %25 = vector.load %arg6[%c0_15, %c0_16] : memref<16x32xf32, #tpu.memory_space<vmem>>, vector<16x32xf32>
      tpu.vector_store %arg6[%c0_15, %c0_16], %24 {strides = array<i32>} : memref<16x32xf32, #tpu.memory_space<vmem>>, vector<16x32xf32>,
    } else {
    }
    %c0 = arith.constant 0 : index
    %c0_1 = arith.constant 0 : index
    %3 = vector.load %arg2[%c0, %c0_1] : memref<16x32xbf16, #tpu.memory_space<vmem>>, vector<16x32xbf16>
    %c0_2 = arith.constant 0 : index
    %c0_3 = arith.constant 0 : index
    %4 = vector.load %arg3[%c0_2, %c0_3] : memref<32x128xbf16, #tpu.memory_space<vmem>>, vector<32x128xbf16>
    %cst = arith.constant dense<0.000000e+00> : vector<16x128xf32>
    %5 = tpu.matmul %3, %4, %cst {dimension_numbers = #tpu.dot_dimension_numbers<[1], [0], [0], [1], [0, 0, 1, 1], [], []>} : vector<16x32xbf16>, vector<32x128xbf16>, vector<16x128xf32> -> vector<16x128xf32>
    %6 = vector.extract_strided_slice %5 {offsets = [0, 0], sizes = [16, 64], strides = [1, 1]} : vector<16x128xf32> to vector<16x64xf32>
    %7 = vector.extract_strided_slice %5 {offsets = [0, 64], sizes = [16, 64], strides = [1, 1]} : vector<16x128xf32> to vector<16x64xf32>
    %8 = arith.negf %6 : vector<16x64xf32>
    %9 = math.exp %8 : vector<16x64xf32>
    %cst_4 = arith.constant 1.000000e+00 : f32
    %10 = vector.broadcast %cst_4 : f32 to vector<16x64xf32>
    %11 = arith.addf %10, %9 : vector<16x64xf32>
    %12 = arith.divf %10, %11 : vector<16x64xf32>
    %13 = arith.mulf %6, %12 : vector<16x64xf32>
    %14 = arith.mulf %13, %7 : vector<16x64xf32>
    %c0_5 = arith.constant 0 : index
    %c0_6 = arith.constant 0 : index
    %15 = vector.load %arg6[%c0_5, %c0_6] : memref<16x32xf32, #tpu.memory_space<vmem>>, vector<16x32xf32>
    %16 = arith.truncf %14 : vector<16x64xf32> to vector<16x64xbf16>
    %c0_7 = arith.constant 0 : index
    %c0_8 = arith.constant 0 : index
    %17 = vector.load %arg4[%c0_7, %c0_8] : memref<64x32xbf16, #tpu.memory_space<vmem>>, vector<64x32xbf16>
    %cst_9 = arith.constant dense<0.000000e+00> : vector<16x32xf32>
    %18 = tpu.matmul %16, %17, %cst_9 {dimension_numbers = #tpu.dot_dimension_numbers<[1], [0], [0], [1], [0, 0, 1, 1], [], []>} : vector<16x64xbf16>, vector<64x32xbf16>, vector<16x32xf32> -> vector<16x32xf32>
    %19 = arith.addf %15, %18 : vector<16x32xf32>
    %c0_10 = arith.constant 0 : index
    %c0_11 = arith.constant 0 : index
    %20 = vector.load %arg6[%c0_10, %c0_11] : memref<16x32xf32, #tpu.memory_space<vmem>>, vector<16x32xf32>
    tpu.vector_store %arg6[%c0_10, %c0_11], %19 {strides = array<i32>} : memref<16x32xf32, #tpu.memory_space<vmem>>, vector<16x32xf32>,
    %c0_i32_12 = arith.constant 0 : i32
    %21 = arith.cmpi eq, %arg1, %c0_i32_12 : i32
    %22 = arith.extui %21 : i1 to i32
    %c0_i32_13 = arith.constant 0 : i32
    %23 = arith.cmpi ne, %22, %c0_i32_13 : i32
    scf.if %23 {
      %c0_14 = arith.constant 0 : index
      %c0_15 = arith.constant 0 : index
      %24 = vector.load %arg6[%c0_14, %c0_15] : memref<16x32xf32, #tpu.memory_space<vmem>>, vector<16x32xf32>
      %25 = arith.truncf %24 : vector<16x32xf32> to vector<16x32xbf16>
      %c0_16 = arith.constant 0 : index
      %c0_17 = arith.constant 0 : index
      %26 = vector.load %arg5[%c0_16, %c0_17] : memref<16x32xbf16, #tpu.memory_space<vmem>>, vector<16x32xbf16>
      tpu.vector_store %arg5[%c0_16, %c0_17], %25 {strides = array<i32>} : memref<16x32xbf16, #tpu.memory_space<vmem>>, vector<16x32xbf16>,
    } else {
    }
    return
  }
  func.func @transform_0(%arg0: i32, %arg1: i32) -> (i32, i32) {
    %c0_i32 = arith.constant 0 : i32
    %c0_i32_0 = arith.constant 0 : i32
    return %arg0, %c0_i32 : i32, i32
  }
  func.func @transform_1(%arg0: i32, %arg1: i32) -> (i32, i32) {
    %c0_i32 = arith.constant 0 : i32
    %c0_i32_0 = arith.constant 0 : i32
    return %c0_i32, %arg1 : i32, i32
  }
  func.func @transform_2(%arg0: i32, %arg1: i32) -> (i32, i32) {
    %c0_i32 = arith.constant 0 : i32
    %c0_i32_0 = arith.constant 0 : i32
    return %arg1, %c0_i32 : i32, i32
  }
  func.func @transform_3(%arg0: i32, %arg1: i32) -> (i32, i32) {
    %c0_i32 = arith.constant 0 : i32
    %c0_i32_0 = arith.constant 0 : i32
    return %arg0, %c0_i32 : i32, i32
  }
}

</mosaic_0001>

<bundles_post_ra>
// kernel: _feed_forward_impl.1
= control target key start
LH: loop header
LB: loop body
LE: loop exit
PB: predicated region body
PF: predicated region fallthrough
CT: control target
= control target key end

     0   :  { %8 = vsyncpa [#allocation4], 0  ;;  %s536_s0 = inlined_call_operand.hbm [shape: bf16[16,32], index: 0, kind: input, shape index: {}]   ;;  %s537_s1 = inlined_call_operand.hbm [shape: bf16[32,128], index: 1, kind: input, shape index: {}]   ;;  %s538_s2 = inlined_call_operand.hbm [shape: bf16[64,32], index: 2, kind: input, shape index: {}]   ;;  %s539_s3 = inlined_call_operand.hbm [shape: bf16[16,32], index: 3, kind: output, shape index: {}]  }
   0x1   :  { %9 = vsyncpa [#allocation7], 0 }
   0x2   :  { %10 = vsyncpa [#allocation5], 0  ;;  %s434_s12 = smov [#allocation6]   ;;  %s435_s14 = smov [#allocation3]  }
   0x3   :  { %s28_s13 = sshll.u32 %s434_s12, 4  ;;  %s16_s15 = sshll.u32 %s435_s14, 4  ;;  %s29_s13 = int_to_ptr.vmem [resolvable:$true] %s28_s13  ;;  %s462_s15 = int_to_ptr.vmem [resolvable:$true] %s16_s15 }
   0x4   :  { %s340_s18 = scalar_lea.hbm %s537_s1, 256 }
   0x5   :  { %p341_p0 = scmp.ne.s32.totalorder %s537_s1, %s340_s18  ;;  %p344_p1 = scmp.lt.u32.totalorder %s340_s18, %s537_s1 }
   0x7   :  { %p346_p2 = pnand %p344_p1, %p341_p0 }
   0x9   :  { %349 = shalt.err (!%p346_p2)
}
   0xa   :  { %s350_s23 = scalar_lea.vmem %s29_s13, 256  ;;  %p355_p4 = scmp.lt.s32.totalorder %s29_s13, %s29_s13 }
   0xb   :  { %p351_p3 = scmp.ne.s32.totalorder %s29_s13, %s350_s23  ;;  %p356_p5 = scmp.lt.s32.totalorder %s350_s23, %s350_s23 }
   0xd   :  { %p357_p6 = por %p356_p5, %p355_p4 }
   0xf   :  { %p358_p7 = pnand %p357_p6, %p351_p3 }
  0x11   :  { %361 = shalt.err (!%p358_p7)
}
  0x12   :  { %s436_s24 = smov 64   ;;  %s437_s25 = smov 4  }
  0x13   :  { %34 = dma.hbm_to_vmem [thread:$0]  %s537_s1, 256, %s29_s13, [#allocation7], %s436_s24, %s436_s24, %s437_s25  }
  0x14   :  { %s362_s30 = scalar_lea.hbm %s536_s0, 128 }
  0x15   :  { %p363_p8 = scmp.ne.s32.totalorder %s536_s0, %s362_s30  ;;  %p366_p9 = scmp.lt.u32.totalorder %s362_s30, %s536_s0 }
  0x17   :  { %p368_p10 = pnand %p366_p9, %p363_p8 }
  0x19   :  { %371 = shalt.err (!%p368_p10)
}
  0x1a   :  { %s372_s8 = scalar_lea.vmem %s462_s15, 128  ;;  %p377_p12 = scmp.lt.s32.totalorder %s462_s15, %s462_s15 }
  0x1b   :  { %p373_p11 = scmp.ne.s32.totalorder %s462_s15, %s372_s8  ;;  %p378_p13 = scmp.lt.s32.totalorder %s372_s8, %s372_s8 }
  0x1d   :  { %p379_p0 = por %p378_p13, %p377_p12 }
  0x1f   :  { %p380_p1 = pnand %p379_p0, %p373_p11 }
  0x21   :  { %383 = shalt.err (!%p380_p1)
}
  0x22   :  { %22 = dma.hbm_to_vmem [thread:$0]  %s536_s0, 128, %s462_s15, [#allocation4], %s436_s24, %s436_s24, %s437_s25  }
  0x23   :  { %s438_s10 = smov [#allocation8]   ;;  %s384_s14 = scalar_lea.hbm %s538_s2, 512 }
  0x24   :  { %s40_s11 = sshll.u32 %s438_s10, 4  ;;  %p385_p2 = scmp.ne.s32.totalorder %s538_s2, %s384_s14  ;;  %s41_s11 = int_to_ptr.vmem [resolvable:$true] %s40_s11 }
  0x25   :  { %p388_p3 = scmp.lt.u32.totalorder %s384_s14, %s538_s2 }
  0x27   :  { %p390_p4 = pnand %p388_p3, %p385_p2 }
  0x29   :  { %393 = shalt.err (!%p390_p4)
}
  0x2a   :  { %s394_s20 = scalar_lea.vmem %s41_s11, 512  ;;  %p399_p6 = scmp.lt.s32.totalorder %s41_s11, %s41_s11 }
  0x2b   :  { %p395_p5 = scmp.ne.s32.totalorder %s41_s11, %s394_s20  ;;  %p400_p7 = scmp.lt.s32.totalorder %s394_s20, %s394_s20 }
  0x2d   :  { %p401_p8 = por %p400_p7, %p399_p6 }
  0x2f   :  { %p402_p9 = pnand %p401_p8, %p395_p5 }
  0x31   :  { %405 = shalt.err (!%p402_p9)
}
  0x32   :  { %46 = dma.hbm_to_vmem [thread:$0]  %s538_s2, 512, %s41_s11, [#allocation7], %s436_s24, %s436_s24, %s437_s25  }
  0x33   :  { %428 = dma.done.wait [#allocation4], 128  }
  0x34   :  { %429 = vsyncadd [#allocation4], 4294967168 }
  0x35   :  { %430 = dma.done.wait [#allocation7], 768  }
  0x36   :  { %431 = vsyncadd [#allocation7], 4294966528  ;;  %vm61_vm0 = vcmask 261120   ;;  %v439_v0 = vmov 0.0   ;;  %vm440_vm1 = vmmov 0   ;;  %v325_v1 = vld [vmem:[#allocation6] sm:$0xff]  }
  0x37   :  { %297 = vmatprep.subr.bf16.mxu0 %v439_v0  ;;  %301 = vmatprep.mubr.msk.bf16.mxu0 %vm440_vm1, %v439_v0  ;;  %62 = vst.msk [vmem:[#allocation2] sm:$0xff] %vm61_vm0, %v439_v0  ;;  %63 = vst.msk [vmem:[#allocation2 + $0x8] sm:$0xff] %vm61_vm0, %v439_v0  ;;  %v326_v2 = vld [vmem:[#allocation6 + $0x8] sm:$0xff]   ;;  %v327_v3 = vld [vmem:[#allocation3] sm:$0xff]   ;;  %vm191_vm2 = vcmask 523264   ;;  %vm253_vm3 = vcmask 257024  }
  0x38   :  { %305 = vmatprep.subr.bf16.mxu1 %v439_v0  ;;  %313 = vmatprep.mubr.msk.bf16.mxu1 %vm440_vm1, %v439_v0  ;;  %v328_v4 = vld [vmem:[#allocation8] sm:$0xff]   ;;  %v329_v5 = vld [vmem:[#allocation8 + $0x8] sm:$0xff]   ;;  %v330_v6 = vld [vmem:[#allocation8 + $0x10] sm:$0xff]   ;;  %s441_s2 = smov [#allocation9]  }
  0x39   :  { %298 = vmatpush3.bf16.msra.mxu0 %v325_v1  ;;  %306 = vmatpush3.bf16.msra.mxu1 %v328_v4  ;;  %v331_v7 = vld [vmem:[#allocation8 + $0x18] sm:$0xff]   ;;  %s261_s21 = sshll.u32 %s441_s2, 4  ;;  %s262_s21 = int_to_ptr.vmem [resolvable:$true] %s261_s21 }
  0x3a   :  { %299 = vmatprep.subr.bf16.mxu0 %v439_v0  ;;  %307 = vmatprep.subr.bf16.mxu1 %v439_v0  ;;  %s406_s22 = scalar_lea.vmem %s262_s21, 128  ;;  %p411_p11 = scmp.lt.s32.totalorder %s262_s21, %s262_s21 }
  0x3b   :  { %p407_p10 = scmp.ne.s32.totalorder %s262_s21, %s406_s22  ;;  %p412_p12 = scmp.lt.s32.totalorder %s406_s22, %s406_s22 }
  0x3d   :  { %300 = vmatpush3.bf16.msra.mxu0 %v326_v2  ;;  %308 = vmatpush3.bf16.msra.mxu1 %v329_v5  ;;  %p413_p13 = por %p412_p12, %p411_p11 }
  0x3e   :  { %309 = vmatprep.subr.bf16.mxu1 %v439_v0  ;;  %v156_v27 = vld [vmem:[#allocation2] sm:$0xff]  ;;  %v157_v29 = vld [vmem:[#allocation2 + $0x8] sm:$0xff] }
  0x3f   :  { %p414_p0 = pnand %p413_p13, %p407_p10 }
  0x40   :  { %302 = vmatmul.mubr.msk.bf16.vlgmr.msra.gmra.mrb[0].mxu0 %vm61_vm0, %v327_v3 }
  0x41   :  { %310 = vmatpush3.bf16.msra.mxu1 %v330_v6 }
  0x42   :  { %311 = vmatprep.subr.bf16.mxu1 %v439_v0 }
  0x45   :  { %312 = vmatpush3.bf16.msra.mxu1 %v331_v7 }
 0x113   :  { %v125_v8 = vpop.f32.mrb[0].mxu0 }
 0x114   :  { %148 = vrot.lane.b32.xlu0 %v125_v8, %s436_s24  ;;  %v303_v9 = vpop.f32.mrb[1].mxu0  ;;  %v278_v12 = vmul.f32 -1.442695, %v125_v8 }
 0x115   :  { %v128_v10 = vpop.f32.mrb[2].mxu0 }
 0x116   :  { %v304_v11 = vpop.f32.mrb[3].mxu0  ;;  %v279_v13 = vmul.f32 -1.442695, %v128_v10  ;;  %332 = vpow2.f32 %v278_v12 }
 0x118   :  { %150 = vrot.lane.b32.xlu0 %v128_v10, %s436_s24  ;;  %334 = vpow2.f32 %v279_v13 }
 0x120   :  { %v333_v14 = vpop.eup %332 }
 0x121   :  { %v138_v16 = vadd.f32 1.0, %v333_v14 }
 0x122   :  { %v335_v15 = vpop.eup %334 }
 0x123   :  { %v139_v17 = vadd.f32 1.0, %v335_v15  ;;  %336 = vrcp.f32 %v138_v16 }
 0x125   :  { %338 = vrcp.f32 %v139_v17 }
 0x12d   :  { %v337_v18 = vpop.eup %336 }
 0x12e   :  { %v144_v21 = vmul.f32 %v337_v18, %v125_v8 }
 0x12f   :  { %v339_v19 = vpop.eup %338 }
 0x130   :  { %v145_v22 = vmul.f32 %v339_v19, %v128_v10 }
 0x186   :  { %v149_v20 = vpop.permute.xlu0 %148 }
 0x187   :  { %v154_v24 = vmul.f32 %v149_v20, %v144_v21 }
 0x18a   :  { %v151_v23 = vpop.permute.xlu0 %150 }
 0x18b   :  { %v155_v25 = vmul.f32 %v151_v23, %v145_v22 }
 0x18d   :  { %v158_v26 = vpack.c.bf16 %v155_v25, %v154_v24 }
 0x18f   :  { %314 = vmatmul.mubr.msk.bf16.vlgmr.msra.gmra.mrb[0].mxu1 %vm191_vm2, %v158_v26 }
 0x262   :  { %v229_v28 = vpop.f32.mrb[0].mxu1 }
 0x263   :  { %v236_v30 = vadd.f32 %v229_v28, %v156_v27  ;;  %v315_v31 = vpop.f32.mrb[1].mxu1 }
 0x264   :  { %v232_v32 = vpop.f32.mrb[2].mxu1 }
 0x265   :  { %238 = vst.msk [vmem:[#allocation2] sm:$0xff] %vm61_vm0, %v236_v30  ;;  %v237_v33 = vadd.f32 %v232_v32, %v157_v29  ;;  %v316_v34 = vpop.f32.mrb[3].mxu1 }
 0x267   :  { %239 = vst.msk [vmem:[#allocation2 + $0x8] sm:$0xff] %vm61_vm0, %v237_v33 }
 0x26c   :  { %v243_v35 = vld [vmem:[#allocation2] sm:$0xff] }
 0x26d   :  { %v287_v36 = vpack.c.bf16 %v243_v35, %v243_v35 }
 0x26e   :  { %v244_v37 = vld [vmem:[#allocation2 + $0x8] sm:$0xff] }
 0x26f   :  { %v288_v38 = vpack.c.bf16 %v244_v37, %v244_v37  ;;  %254 = vst.msk [vmem:[#allocation9] sm:$0xf] %vm253_vm3, %v287_v36 }
 0x271   :  { %255 = vst.msk [vmem:[#allocation9 + $0x4] sm:$0xf] %vm253_vm3, %v288_v38 }
 0x272   :  { %417 = shalt.err (!%p414_p0)
}
 0x273   :  { %s418_s27 = scalar_lea.hbm %s539_s3, 128 }
 0x274   :  { %p419_p1 = scmp.ne.s32.totalorder %s539_s3, %s418_s27  ;;  %p422_p2 = scmp.lt.u32.totalorder %s418_s27, %s539_s3 }
 0x276   :  { %p424_p3 = pnand %p422_p2, %p419_p1 }
 0x278   :  { %427 = shalt.err (!%p424_p3)
}
 0x279   :  { %267 = dma.vmem_to_hbm [thread:$0]  %s262_s21, 128, %s539_s3, [#allocation5], %s436_s24, %s436_s24, %s437_s25  }
 0x27a   :  { %432 = dma.done.wait [#allocation5], 128  }
 0x27b   :  { %433 = vsyncadd [#allocation5], 4294967168 }
 0x27c   :  { %271 = vsyncpa [#allocation4], 1 }
 0x27d   :  { %272 = vsyncpa [#allocation7], 1 }
 0x27e   :  { %273 = vsyncpa [#allocation5], 1 }

</bundles_post_ra>
